<compile_context>
chip_gen: v5e
topology: v5e:2x2
jax: 0.10.0
libtpu: 0.0.40
codegen_flags: <defaults>
</compile_context>

<pallas_src>
import jax
import jax.numpy as jnp
from jax.experimental import pallas as pl
from jax.experimental.pallas import tpu as pltpu

INPUT_SIZE = 100
HIDDEN_SIZE = 64
OUTPUT_SIZE = 3

MAX_TM = 2048  # rows per grid step; ~0.8 MiB of x per buffer at f32, VMEM-safe.


def _round_up(n, m):
    return ((n + m - 1) // m) * m


def _pick_tile(batch, mult):
    """Batch tile: multiple of `mult`, <= MAX_TM, >= 2 grid steps when possible."""
    b_up = _round_up(batch, mult)
    if b_up <= mult:
        return mult
    # Split the batch in two so a 'parallel' grid axis gives both v7x
    # TensorCores work; cap so per-step VMEM stays small on every generation.
    tm = _round_up(pl.cdiv(batch, 2), mult)
    return min(tm, MAX_TM)


def _mlp_kernel(x_ref, w1_ref, b1_ref, w2_ref, b2_ref, out_ref):
    # fc1 on the MXU with f32 accumulation; bias add + ReLU in f32 on the VPU.
    h = jnp.dot(x_ref[...], w1_ref[...], preferred_element_type=jnp.float32)
    h = jnp.maximum(h + b1_ref[...], 0.0)
    # fc2: cast the activation back to the MXU input dtype (no-op for f32).
    o = jnp.dot(h.astype(w2_ref.dtype), w2_ref[...],
                preferred_element_type=jnp.float32)
    out_ref[...] = (o + b2_ref[...]).astype(out_ref.dtype)


def simple_nlp_model(x, w1, b1, w2, b2, *, tm=None, compute_dtype=jnp.float32):
    """x: (B, 100). w1: (100, 64), b1: (64,), w2: (64, 3), b2: (3,).

    Returns (B, 3) float32, same math as the PyTorch module.
    compute_dtype: MXU input dtype for x/W1/W2 (f32 for exact parity,
    bf16 halves the dominant x HBM stream on v6e/v7x; accumulation stays f32).
    """
    B = x.shape[0]
    assert x.shape[1] == INPUT_SIZE

    # TODO(synk): if the caller already holds x/weights in bf16, these casts
    # are no-ops; otherwise the cast is a cheap XLA op outside the kernel.
    x_c = x.astype(compute_dtype)
    w1_c = w1.astype(compute_dtype)
    w2_c = w2.astype(compute_dtype)
    # Biases stay f32 (bias add + ReLU are done in f32 inside the kernel).
    b1_2d = b1.reshape(1, HIDDEN_SIZE).astype(jnp.float32)
    b2_2d = b2.reshape(1, OUTPUT_SIZE).astype(jnp.float32)

    # Sublane multiple for the batch tile (8 for 4-byte, 16 for 2-byte dtypes).
    mult = max(8, 32 // jnp.dtype(compute_dtype).itemsize)
    if tm is None:
        tm = _pick_tile(B, mult)
    grid = (pl.cdiv(B, tm),)

    in_bytes = jnp.dtype(compute_dtype).itemsize
    cost = pl.CostEstimate(
        flops=2 * B * (INPUT_SIZE * HIDDEN_SIZE + HIDDEN_SIZE * OUTPUT_SIZE),
        transcendentals=0,
        bytes_accessed=(
            B * INPUT_SIZE * in_bytes                     # x read (tiled)
            + B * OUTPUT_SIZE * 4                         # narrow output write
            + (INPUT_SIZE * HIDDEN_SIZE
               + HIDDEN_SIZE * OUTPUT_SIZE) * in_bytes    # weights (one-time)
            + (HIDDEN_SIZE + OUTPUT_SIZE) * 4),           # biases (one-time)
    )

    out = pl.pallas_call(
        _mlp_kernel,
        out_shape=jax.ShapeDtypeStruct((B, OUTPUT_SIZE), jnp.float32),
        grid=grid,
        in_specs=[
            # x: tiled over the batch grid; last dim 100 == full array dim.
            pl.BlockSpec((tm, INPUT_SIZE), lambda i: (i, 0)),
            # Weights / biases: constant index -> resident in VMEM.
            pl.BlockSpec((INPUT_SIZE, HIDDEN_SIZE), lambda i: (0, 0)),
            pl.BlockSpec((1, HIDDEN_SIZE), lambda i: (0, 0)),
            pl.BlockSpec((HIDDEN_SIZE, OUTPUT_SIZE), lambda i: (0, 0)),
            pl.BlockSpec((1, OUTPUT_SIZE), lambda i: (0, 0)),
        ],
        # Narrow (3-lane) output block; last dim 3 == full array dim.
        out_specs=pl.BlockSpec((tm, OUTPUT_SIZE), lambda i: (i, 0)),
        compiler_params=pltpu.CompilerParams(
            dimension_semantics=("parallel",)),
        cost_estimate=cost,
    )(x_c, w1_c, b1_2d, w2_c, b2_2d)

    return out


def init_params(key):
    """Deterministic init mimicking nn.Linear default: U(-1/sqrt(fan_in), ...)."""
    k1, k2, k3, k4 = jax.random.split(key, 4)
    bound1 = 1.0 / jnp.sqrt(INPUT_SIZE)
    bound2 = 1.0 / jnp.sqrt(HIDDEN_SIZE)
    w1 = jax.random.uniform(k1, (INPUT_SIZE, HIDDEN_SIZE), jnp.float32,
                            -bound1, bound1)
    b1 = jax.random.uniform(k2, (HIDDEN_SIZE,), jnp.float32, -bound1, bound1)
    w2 = jax.random.uniform(k3, (HIDDEN_SIZE, OUTPUT_SIZE), jnp.float32,
                            -bound2, bound2)
    b2 = jax.random.uniform(k4, (OUTPUT_SIZE,), jnp.float32, -bound2, bound2)
    return w1, b1, w2, b2


def _ref(x, w1, b1, w2, b2):
    return jnp.maximum(x @ w1 + b1, 0.0) @ w2 + b2


if __name__ == "__main__":
    key = jax.random.PRNGKey(0)
    k_x, k_p = jax.random.split(key)
    w1, b1, w2, b2 = init_params(k_p)

    # Small batch, exact tile, f32 (exact parity with the PyTorch module).
    batch = 8
    x = jax.random.normal(k_x, (batch, INPUT_SIZE), jnp.float32)
    out = jax.block_until_ready(simple_nlp_model(x, w1, b1, w2, b2))
    ref = _ref(x, w1, b1, w2, b2)
    assert out.shape == (batch, OUTPUT_SIZE)
    assert jnp.allclose(out, ref, atol=1e-5, rtol=1e-5)

    # Larger batch, non-multiple of the tile (partial last block, grid of 2).
    big_b = 300
    x_big = jax.random.normal(k_x, (big_b, INPUT_SIZE), jnp.float32)
    out_big = jax.block_until_ready(simple_nlp_model(x_big, w1, b1, w2, b2))
    ref_big = _ref(x_big, w1, b1, w2, b2)
    assert out_big.shape == (big_b, OUTPUT_SIZE)
    assert jnp.allclose(out_big, ref_big, atol=1e-5, rtol=1e-5)

    # bf16 MXU-input path (f32 accumulation, f32 bias/ReLU): loose tolerance.
    bf_b = 64
    x_bf = jax.random.normal(k_x, (bf_b, INPUT_SIZE), jnp.float32)
    out_bf = jax.block_until_ready(
        simple_nlp_model(x_bf, w1, b1, w2, b2, compute_dtype=jnp.bfloat16))
    ref_bf = _ref(x_bf, w1, b1, w2, b2)
    assert out_bf.shape == (bf_b, OUTPUT_SIZE)
    assert jnp.allclose(out_bf, ref_bf, atol=5e-2, rtol=5e-2)

    print("KERNEL_OK")
</pallas_src>

<mosaic_0001>
module attributes {stable_mosaic.version = 11 : i64} {
  func.func @_mlp_kernel(%arg0: i32, %arg1: memref<8x100xf32, #tpu.memory_space<vmem>>, %arg2: memref<100x64xf32, #tpu.memory_space<vmem>>, %arg3: memref<1x64xf32, #tpu.memory_space<vmem>>, %arg4: memref<64x3xf32, #tpu.memory_space<vmem>>, %arg5: memref<1x3xf32, #tpu.memory_space<vmem>>, %arg6: memref<8x3xf32, #tpu.memory_space<vmem>>) attributes {dimension_semantics = [#tpu.dimension_semantics<parallel>], iteration_bounds = array<i64: 1>, scalar_prefetch = 0 : i64, scratch_operands = 0 : i64, tpu.core_type = #tpu.core_type<tc>, window_params = [{transform_indices = @transform_0, window_bounds = array<i64: 8, 100>}, {pipeline_mode = #tpu.pipeline_mode<synchronous>, transform_indices = @transform_1, window_bounds = array<i64: 100, 64>}, {pipeline_mode = #tpu.pipeline_mode<synchronous>, transform_indices = @transform_2, window_bounds = array<i64: 1, 64>}, {pipeline_mode = #tpu.pipeline_mode<synchronous>, transform_indices = @transform_3, window_bounds = array<i64: 64, 3>}, {pipeline_mode = #tpu.pipeline_mode<synchronous>, transform_indices = @transform_4, window_bounds = array<i64: 1, 3>}, {transform_indices = @transform_5, window_bounds = array<i64: 8, 3>}]} {
    %c0 = arith.constant 0 : index
    %c0_0 = arith.constant 0 : index
    %0 = vector.load %arg1[%c0, %c0_0] : memref<8x100xf32, #tpu.memory_space<vmem>>, vector<8x100xf32>
    %c0_1 = arith.constant 0 : index
    %c0_2 = arith.constant 0 : index
    %1 = vector.load %arg2[%c0_1, %c0_2] : memref<100x64xf32, #tpu.memory_space<vmem>>, vector<100x64xf32>
    %cst = arith.constant dense<0.000000e+00> : vector<8x64xf32>
    %2 = tpu.matmul %0, %1, %cst {dimension_numbers = #tpu.dot_dimension_numbers<[1], [0], [0], [1], [0, 0, 1, 1], [], []>} : vector<8x100xf32>, vector<100x64xf32>, vector<8x64xf32> -> vector<8x64xf32>
    %c0_3 = arith.constant 0 : index
    %c0_4 = arith.constant 0 : index
    %3 = vector.load %arg3[%c0_3, %c0_4] : memref<1x64xf32, #tpu.memory_space<vmem>>, vector<1x64xf32>
    %4 = vector.broadcast %3 : vector<1x64xf32> to vector<8x64xf32>
    %5 = arith.addf %2, %4 : vector<8x64xf32>
    %cst_5 = arith.constant 0.000000e+00 : f32
    %6 = vector.broadcast %cst_5 : f32 to vector<8x64xf32>
    %7 = arith.maximumf %5, %6 : vector<8x64xf32>
    %c0_6 = arith.constant 0 : index
    %c0_7 = arith.constant 0 : index
    %8 = vector.load %arg4[%c0_6, %c0_7] : memref<64x3xf32, #tpu.memory_space<vmem>>, vector<64x3xf32>
    %cst_8 = arith.constant dense<0.000000e+00> : vector<8x3xf32>
    %9 = tpu.matmul %7, %8, %cst_8 {dimension_numbers = #tpu.dot_dimension_numbers<[1], [0], [0], [1], [0, 0, 1, 1], [], []>} : vector<8x64xf32>, vector<64x3xf32>, vector<8x3xf32> -> vector<8x3xf32>
    %c0_9 = arith.constant 0 : index
    %c0_10 = arith.constant 0 : index
    %10 = vector.load %arg5[%c0_9, %c0_10] : memref<1x3xf32, #tpu.memory_space<vmem>>, vector<1x3xf32>
    %11 = vector.broadcast %10 : vector<1x3xf32> to vector<8x3xf32>
    %12 = arith.addf %9, %11 : vector<8x3xf32>
    %c0_11 = arith.constant 0 : index
    %c0_12 = arith.constant 0 : index
    %13 = vector.load %arg6[%c0_11, %c0_12] : memref<8x3xf32, #tpu.memory_space<vmem>>, vector<8x3xf32>
    tpu.vector_store %arg6[%c0_11, %c0_12], %12 {strides = array<i32>} : memref<8x3xf32, #tpu.memory_space<vmem>>, vector<8x3xf32>,
    return
  }
  func.func @transform_0(%arg0: i32) -> (i32, i32) {
    %c0_i32 = arith.constant 0 : i32
    %c0_i32_0 = arith.constant 0 : i32
    return %arg0, %c0_i32 : i32, i32
  }
  func.func @transform_1(%arg0: i32) -> (i32, i32) {
    %c0_i32 = arith.constant 0 : i32
    %c0_i32_0 = arith.constant 0 : i32
    %c0_i32_1 = arith.constant 0 : i32
    return %c0_i32, %c0_i32_0 : i32, i32
  }
  func.func @transform_2(%arg0: i32) -> (i32, i32) {
    %c0_i32 = arith.constant 0 : i32
    %c0_i32_0 = arith.constant 0 : i32
    %c0_i32_1 = arith.constant 0 : i32
    return %c0_i32, %c0_i32_0 : i32, i32
  }
  func.func @transform_3(%arg0: i32) -> (i32, i32) {
    %c0_i32 = arith.constant 0 : i32
    %c0_i32_0 = arith.constant 0 : i32
    %c0_i32_1 = arith.constant 0 : i32
    return %c0_i32, %c0_i32_0 : i32, i32
  }
  func.func @transform_4(%arg0: i32) -> (i32, i32) {
    %c0_i32 = arith.constant 0 : i32
    %c0_i32_0 = arith.constant 0 : i32
    %c0_i32_1 = arith.constant 0 : i32
    return %c0_i32, %c0_i32_0 : i32, i32
  }
  func.func @transform_5(%arg0: i32) -> (i32, i32) {
    %c0_i32 = arith.constant 0 : i32
    %c0_i32_0 = arith.constant 0 : i32
    return %arg0, %c0_i32 : i32, i32
  }
}

</mosaic_0001>

<bundles_post_ra>
// kernel: tpu_custom_call.1
= control target key start
LH: loop header
LB: loop body
LE: loop exit
PB: predicated region body
PF: predicated region fallthrough
CT: control target
= control target key end

     0   :  { %vm42_vm0 = vcmask 1043456   ;;  %vm38_vm1 = vcmask 818176   ;;  %vm79_vm2 = vcmask 523264   ;;  %vm103_vm3 = vcmask 23552   ;;  %s219_s1 = inlined_call_operand.vmem [shape: f32[100,64], index: 1, kind: input, shape index: {}]   ;;  %s220_s3 = inlined_call_operand.vmem [shape: f32[64,3], index: 3, kind: input, shape index: {}]   ;;  %s221_s2 = inlined_call_operand.vmem [shape: f32[1,64], index: 2, kind: input, shape index: {}]   ;;  %s222_s0 = inlined_call_operand.vmem [shape: f32[8,100], index: 0, kind: input, shape index: {}]   ;;  %s223_s4 = inlined_call_operand.vmem [shape: f32[1,3], index: 4, kind: input, shape index: {}]   ;;  %s224_s5 = inlined_call_operand.vmem [shape: f32[8,3], index: 5, kind: output, shape index: {}]  }
   0x1   :  { %v33_v0 = vld [vmem:[%s219_s1 + $0x60] sm:$0xf]  ;;  %v32_v1 = vld [vmem:[%s219_s1 + $0x58] sm:$0xff]  ;;  %v31_v2 = vld [vmem:[%s219_s1 + $0x50] sm:$0xff] }
   0x2   :  { %109 = vmatpush.msk.msra.mxu0 %vm42_vm0, %v33_v0  ;;  %v30_v3 = vld [vmem:[%s219_s1 + $0x48] sm:$0xff]  ;;  %v74_v4 = vld [vmem:[%s220_s3 + $0x38] sm:$0xff]  ;;  %v73_v5 = vld [vmem:[%s220_s3 + $0x30] sm:$0xff] }
   0x3   :  { %91 = vmatpush.msra.mxu1 %v74_v4  ;;  %v29_v6 = vld [vmem:[%s219_s1 + $0x40] sm:$0xff]  ;;  %v72_v7 = vld [vmem:[%s220_s3 + $0x28] sm:$0xff]  ;;  %v28_v8 = vld [vmem:[%s219_s1 + $0x38] sm:$0xff] }
   0x4   :  { %50 = vmatpush.msra.mxu0 %v32_v1  ;;  %v71_v9 = vld [vmem:[%s220_s3 + $0x20] sm:$0xff]  ;;  %v27_v10 = vld [vmem:[%s219_s1 + $0x30] sm:$0xff]  ;;  %v70_v11 = vld [vmem:[%s220_s3 + $0x18] sm:$0xff] }
   0x5   :  { %92 = vmatpush.msra.mxu1 %v73_v5  ;;  %v26_v12 = vld [vmem:[%s219_s1 + $0x28] sm:$0xff]  ;;  %v25_v13 = vld [vmem:[%s219_s1 + $0x20] sm:$0xff]  ;;  %v24_v14 = vld [vmem:[%s219_s1 + $0x18] sm:$0xff] }
   0x6   :  { %51 = vmatpush.msra.mxu0 %v31_v2  ;;  %v23_v15 = vld [vmem:[%s219_s1 + $0x10] sm:$0xff]  ;;  %v22_v16 = vld [vmem:[%s219_s1 + $0x8] sm:$0xff]  ;;  %v21_v17 = vld [vmem:[%s219_s1] sm:$0xff] }
   0x7   :  { %93 = vmatpush.msra.mxu1 %v72_v7  ;;  %v20_v18 = vld [vmem:[%s222_s0] sm:$0xff]  ;;  %v69_v19 = vld [vmem:[%s220_s3 + $0x10] sm:$0xff]  ;;  %v68_v20 = vld [vmem:[%s220_s3 + $0x8] sm:$0xff] }
   0x8   :  { %52 = vmatpush.msra.mxu0 %v30_v3  ;;  %v67_v21 = vld [vmem:[%s220_s3] sm:$0xff] }
   0x9   :  { %94 = vmatpush.msra.mxu1 %v71_v9  ;;  %v112_v22 = vld [vmem:[%s221_s2] ss:$0 sm:$0xff] }
   0xa   :  { %53 = vmatpush.msra.mxu0 %v29_v6  ;;  %v113_v26 = vld [vmem:[%s223_s4] ss:$0 sm:$0xff] }
   0xb   :  { %95 = vmatpush.msra.mxu1 %v70_v11 }
   0xc   :  { %54 = vmatpush.msra.mxu0 %v28_v8 }
   0xd   :  { %96 = vmatpush.msra.mxu1 %v69_v19 }
   0xe   :  { %55 = vmatpush.msra.mxu0 %v27_v10 }
   0xf   :  { %97 = vmatpush.msra.mxu1 %v68_v20 }
  0x10   :  { %56 = vmatpush.msra.mxu0 %v26_v12 }
  0x11   :  { %98 = vmatpush.msra.mxu1 %v67_v21 }
  0x12   :  { %57 = vmatpush.msra.mxu0 %v25_v13 }
  0x14   :  { %58 = vmatpush.msra.mxu0 %v24_v14 }
  0x16   :  { %59 = vmatpush.msra.mxu0 %v23_v15 }
  0x18   :  { %60 = vmatpush.msra.mxu0 %v22_v16 }
  0x1a   :  { %61 = vmatpush.msra.mxu0 %v21_v17 }
  0x1b   :  { %110 = vmatmul.msk.f32.vlgmr.msra.gmra.mxu0 %vm38_vm1, %v20_v18 }
  0x98   :  { %v63_v23 = vpop.f32.mrf.mxu0 }
  0x99   :  { %v64_v24 = vadd.f32 %v112_v22, %v63_v23 }
  0x9b   :  { %v66_v25 = vmax.f32 %v64_v24, 0.0 }
  0x9d   :  { %111 = vmatmul.msk.f32.vlgmr.msra.gmra.mxu1 %vm79_vm2, %v66_v25 }
 0x11a   :  { %v100_v27 = vpop.f32.mrf.mxu1 }
 0x11b   :  { %v101_v28 = vadd.f32 %v113_v26, %v100_v27 }
 0x11d   :  { %104 = vst.msk [vmem:[%s224_s5] sm:$0xff] %vm103_vm3, %v101_v28 }

</bundles_post_ra>
